<compile_context>
chip_gen: v6e
topology: v6e:2x2x1
jax: 0.10.0
libtpu: 0.0.40
codegen_flags: <defaults>
</compile_context>

<pallas_src>
import functools

import jax
import jax.numpy as jnp
from jax.experimental import pallas as pl
from jax.experimental.pallas import tpu as pltpu

EPS = 1e-10


def _suffix_kernel(inv_tau, logits_ref, u_ref, embed_ref, out_ref):
    # One (TM, V) row tile per grid step; elementwise math in f32.
    logits = logits_ref[...].astype(jnp.float32)
    u = u_ref[...]  # uniform [0, 1), f32

    # Gumbel noise: -log(-log(u + eps) + eps)  (matches the reference module).
    gumbel = -jnp.log(-jnp.log(u + EPS) + EPS)

    # Single max-shift for numerical stability (the reference module's extra shift of the raw
    # logits is redundant because softmax is shift invariant).
    z = (logits + gumbel) * inv_tau
    z = z - jnp.max(z, axis=-1, keepdims=True)

    e = jnp.exp(z)                              # unnormalized probs, max value 1.0
    denom = jnp.sum(e, axis=-1, keepdims=True)  # (TM, 1)

    # bf16 x bf16 -> f32 accumulation on the MXU; normalize after the (linear) matmul.
    acc = jnp.dot(
        e.astype(jnp.bfloat16),
        embed_ref[...],
        preferred_element_type=jnp.float32,
    )                                           # (TM, Hp) f32

    # TODO(synk): pl.reciprocal(approx=True) would push this to the EUP, but it has no
    #             CPU/interpret lowering, so use a plain reciprocal (only TM values anyway).
    inv_denom = 1.0 / denom
    out_ref[...] = (acc * inv_denom).astype(out_ref.dtype)


def suffix_optimizer_forward(suffix_logits, embed, key, tau=1.0):
    """suffix_logits: (B, S, V), embed: (V, H) -> (B, S, H) = gumbel_softmax(logits, tau) @ embed."""
    B, S, V = suffix_logits.shape
    V2, H = embed.shape
    assert V == V2

    out_dtype = suffix_logits.dtype
    BS = B * S

    # Fold B*S into the matmul M dimension; pick a row tile (multiple of 8, capped at 256).
    if BS <= 256:
        TM = max(8, ((BS + 7) // 8) * 8)
    else:
        TM = 256
    BS_pad = pl.cdiv(BS, TM) * TM

    # Lane-dense output: pad H up to a multiple of 128 so stores are unmasked full-width rows.
    Hp = pl.cdiv(H, 128) * 128

    logits2d = suffix_logits.reshape(BS, V)
    if BS_pad != BS:
        logits2d = jnp.pad(logits2d, ((0, BS_pad - BS), (0, 0)))

    # Uniform noise for the Gumbel perturbation (see TODO about the in-kernel PRNG).
    u = jax.random.uniform(key, (BS_pad, V), dtype=jnp.float32)

    # bf16 operands for the MXU (f32 accumulation happens inside the kernel).
    embed_bf16 = embed.astype(jnp.bfloat16)
    if Hp != H:
        embed_bf16 = jnp.pad(embed_bf16, ((0, 0), (0, Hp - H)))

    kernel = functools.partial(_suffix_kernel, 1.0 / float(tau))

    out = pl.pallas_call(
        kernel,
        out_shape=jax.ShapeDtypeStruct((BS_pad, Hp), out_dtype),
        grid_spec=pltpu.PrefetchScalarGridSpec(
            num_scalar_prefetch=0,
            grid=(BS_pad // TM,),
            in_specs=[
                pl.BlockSpec((TM, V), lambda i: (i, 0)),   # logits row tile
                pl.BlockSpec((TM, V), lambda i: (i, 0)),   # uniform noise row tile
                pl.BlockSpec((V, Hp), lambda i: (0, 0)),   # embed, resident across the grid
            ],
            out_specs=pl.BlockSpec((TM, Hp), lambda i: (i, 0)),
        ),
        compiler_params=pltpu.CompilerParams(
            # Row tiles are independent -> shard across TensorCores on v7x (no-op on v5e/v6e).
            dimension_semantics=("parallel",),
        ),
    )(logits2d, u, embed_bf16)

    return out[:BS, :H].reshape(B, S, H)


if __name__ == "__main__":
    # Small shapes consistent with the module.
    batch_size, suffix_len, vocab_size, hidden_size = 2, 8, 128, 32

    key = jax.random.PRNGKey(0)
    k_logit, k_embed, k_noise = jax.random.split(key, 3)

    # Deterministic "initial_suffix_logit", repeated across the batch (as in __init__).
    initial_suffix_logit = jax.random.normal(
        k_logit, (suffix_len, vocab_size), dtype=jnp.float32
    )
    suffix_logits = jnp.broadcast_to(
        initial_suffix_logit, (batch_size, suffix_len, vocab_size)
    ).astype(jnp.bfloat16)

    # Deterministic embedding matrix (self.embed), set in-script.
    embed = jax.random.normal(
        k_embed, (vocab_size, hidden_size), dtype=jnp.float32
    ).astype(jnp.bfloat16)

    out = suffix_optimizer_forward(suffix_logits, embed, k_noise, tau=1.0)
    out = jax.block_until_ready(out)

    assert out.shape == (batch_size, suffix_len, hidden_size)
    assert jnp.all(jnp.isfinite(out.astype(jnp.float32)))

    # Sanity check against a pure-JAX reference using the exact same noise stream.
    u_ref = jax.random.uniform(
        k_noise, (batch_size * suffix_len, vocab_size), dtype=jnp.float32
    )
    gumbel_ref = -jnp.log(-jnp.log(u_ref + EPS) + EPS)
    logits_f32 = suffix_logits.reshape(-1, vocab_size).astype(jnp.float32)
    probs_ref = jax.nn.softmax(logits_f32 + gumbel_ref, axis=-1)
    ref = (probs_ref @ embed.astype(jnp.float32)).reshape(out.shape)
    max_err = jnp.max(jnp.abs(out.astype(jnp.float32) - ref))
    assert max_err < 0.1, max_err

    print("KERNEL_OK")
</pallas_src>

<mosaic_0001>
module attributes {stable_mosaic.version = 11 : i64} {
  func.func @_suffix_kernel(%arg0: i32, %arg1: memref<16x128xbf16, #tpu.memory_space<vmem>>, %arg2: memref<16x128xf32, #tpu.memory_space<vmem>>, %arg3: memref<128x128xbf16, #tpu.memory_space<vmem>>, %arg4: memref<16x128xbf16, #tpu.memory_space<vmem>>) attributes {dimension_semantics = [#tpu.dimension_semantics<parallel>], iteration_bounds = array<i64: 1>, scalar_prefetch = 0 : i64, scratch_operands = 0 : i64, tpu.core_type = #tpu.core_type<tc>, window_params = [{transform_indices = @transform_0, window_bounds = array<i64: 16, 128>}, {transform_indices = @transform_1, window_bounds = array<i64: 16, 128>}, {pipeline_mode = #tpu.pipeline_mode<synchronous>, transform_indices = @transform_2, window_bounds = array<i64: 128, 128>}, {transform_indices = @transform_3, window_bounds = array<i64: 16, 128>}]} {
    %c0 = arith.constant 0 : index
    %c0_0 = arith.constant 0 : index
    %0 = vector.load %arg1[%c0, %c0_0] : memref<16x128xbf16, #tpu.memory_space<vmem>>, vector<16x128xbf16>
    %1 = arith.extf %0 : vector<16x128xbf16> to vector<16x128xf32>
    %c0_1 = arith.constant 0 : index
    %c0_2 = arith.constant 0 : index
    %2 = vector.load %arg2[%c0_1, %c0_2] : memref<16x128xf32, #tpu.memory_space<vmem>>, vector<16x128xf32>
    %cst = arith.constant 1.000000e-10 : f32
    %3 = vector.broadcast %cst : f32 to vector<16x128xf32>
    %4 = arith.addf %2, %3 : vector<16x128xf32>
    %5 = math.log %4 : vector<16x128xf32>
    %cst_3 = arith.constant 0.000000e+00 : f32
    %6 = vector.broadcast %cst_3 : f32 to vector<16x128xf32>
    %7 = arith.subf %6, %5 : vector<16x128xf32>
    %cst_4 = arith.constant 1.000000e-10 : f32
    %8 = vector.broadcast %cst_4 : f32 to vector<16x128xf32>
    %9 = arith.addf %7, %8 : vector<16x128xf32>
    %10 = math.log %9 : vector<16x128xf32>
    %cst_5 = arith.constant 0.000000e+00 : f32
    %11 = vector.broadcast %cst_5 : f32 to vector<16x128xf32>
    %12 = arith.subf %11, %10 : vector<16x128xf32>
    %13 = arith.addf %1, %12 : vector<16x128xf32>
    %cst_6 = arith.constant 1.000000e+00 : f32
    %14 = vector.broadcast %cst_6 : f32 to vector<16x128xf32>
    %15 = arith.mulf %13, %14 : vector<16x128xf32>
    %cst_7 = arith.constant dense<0xFF800000> : vector<16xf32>
    %16 = vector.multi_reduction <maximumf>, %15, %cst_7 [1] : vector<16x128xf32> to vector<16xf32>
    %17 = vector.shape_cast %16 : vector<16xf32> to vector<16x1xf32>
    %18 = vector.broadcast %17 : vector<16x1xf32> to vector<16x128xf32>
    %19 = arith.subf %15, %18 : vector<16x128xf32>
    %20 = math.exp %19 : vector<16x128xf32>
    %cst_8 = arith.constant dense<0.000000e+00> : vector<16xf32>
    %21 = vector.multi_reduction <add>, %20, %cst_8 [1] : vector<16x128xf32> to vector<16xf32>
    %22 = vector.shape_cast %21 : vector<16xf32> to vector<16x1xf32>
    %23 = arith.truncf %20 : vector<16x128xf32> to vector<16x128xbf16>
    %c0_9 = arith.constant 0 : index
    %c0_10 = arith.constant 0 : index
    %24 = vector.load %arg3[%c0_9, %c0_10] : memref<128x128xbf16, #tpu.memory_space<vmem>>, vector<128x128xbf16>
    %cst_11 = arith.constant dense<0.000000e+00> : vector<16x128xf32>
    %25 = tpu.matmul %23, %24, %cst_11 {dimension_numbers = #tpu.dot_dimension_numbers<[1], [0], [0], [1], [0, 0, 1, 1], [], []>} : vector<16x128xbf16>, vector<128x128xbf16>, vector<16x128xf32> -> vector<16x128xf32>
    %cst_12 = arith.constant 1.000000e+00 : f32
    %26 = vector.broadcast %cst_12 : f32 to vector<16x1xf32>
    %27 = arith.divf %26, %22 : vector<16x1xf32>
    %28 = vector.broadcast %27 : vector<16x1xf32> to vector<16x128xf32>
    %29 = arith.mulf %25, %28 : vector<16x128xf32>
    %30 = arith.truncf %29 : vector<16x128xf32> to vector<16x128xbf16>
    %c0_13 = arith.constant 0 : index
    %c0_14 = arith.constant 0 : index
    %31 = vector.load %arg4[%c0_13, %c0_14] : memref<16x128xbf16, #tpu.memory_space<vmem>>, vector<16x128xbf16>
    tpu.vector_store %arg4[%c0_13, %c0_14], %30 {strides = array<i32>} : memref<16x128xbf16, #tpu.memory_space<vmem>>, vector<16x128xbf16>,
    return
  }
  func.func @transform_0(%arg0: i32) -> (i32, i32) {
    %c0_i32 = arith.constant 0 : i32
    %c0_i32_0 = arith.constant 0 : i32
    return %arg0, %c0_i32 : i32, i32
  }
  func.func @transform_1(%arg0: i32) -> (i32, i32) {
    %c0_i32 = arith.constant 0 : i32
    %c0_i32_0 = arith.constant 0 : i32
    return %arg0, %c0_i32 : i32, i32
  }
  func.func @transform_2(%arg0: i32) -> (i32, i32) {
    %c0_i32 = arith.constant 0 : i32
    %c0_i32_0 = arith.constant 0 : i32
    %c0_i32_1 = arith.constant 0 : i32
    return %c0_i32, %c0_i32_0 : i32, i32
  }
  func.func @transform_3(%arg0: i32) -> (i32, i32) {
    %c0_i32 = arith.constant 0 : i32
    %c0_i32_0 = arith.constant 0 : i32
    return %arg0, %c0_i32 : i32, i32
  }
}

</mosaic_0001>

<bundles_post_ra>
// kernel: tpu_custom_call.1
= control target key start
LH: loop header
LB: loop body
LE: loop exit
PB: predicated region body
PF: predicated region fallthrough
CT: control target
= control target key end

     0   :  { %8 = vsyncpa [#allocation3], 0  ;;  %s456_s0 = inlined_call_operand.hbm [shape: bf16[16,128], index: 0, kind: input, shape index: {}]   ;;  %s457_s1 = inlined_call_operand.hbm [shape: f32[16,128], index: 1, kind: input, shape index: {}]   ;;  %s458_s2 = inlined_call_operand.hbm [shape: bf16[128,128], index: 2, kind: input, shape index: {}]   ;;  %s459_s3 = inlined_call_operand.hbm [shape: bf16[16,128], index: 3, kind: output, shape index: {}]  }
   0x1   :  { %9 = vsyncpa [#allocation6], 0 }
   0x2   :  { %10 = vsyncpa [#allocation4], 0  ;;  %s405_s12 = smov [#allocation5]  }
   0x3   :  { %s28_s13 = sshll.u32 %s405_s12, 4  ;;  %s29_s13 = int_to_ptr.vmem [resolvable:$true] %s28_s13 }
   0x4   :  { %s327_s14 = scalar_lea.vmem %s29_s13, 256  ;;  %p332_p1 = scmp.lt.s32.totalorder %s29_s13, %s29_s13 }
   0x5   :  { %p328_p0 = scmp.ne.s32.totalorder %s29_s13, %s327_s14  ;;  %p333_p2 = scmp.lt.s32.totalorder %s327_s14, %s327_s14 }
   0x7   :  { %p334_p3 = por %p333_p2, %p332_p1 }
   0x9   :  { %p335_p4 = pnand %p334_p3, %p328_p0 }
   0xb   :  { %338 = shalt.err (!%p335_p4)
}
   0xc   :  { %s406_s15 = smov 128   ;;  %s407_s16 = smov 8  }
   0xd   :  { %34 = dma.hbm_to_vmem [thread:$0]  %s457_s1, 256, %s29_s13, [#allocation6], %s406_s15, %s406_s15, %s407_s16  }
   0xe   :  { %s408_s19 = smov [#allocation2]  }
   0xf   :  { %s16_s20 = sshll.u32 %s408_s19, 4  ;;  %s17_s20 = int_to_ptr.vmem [resolvable:$true] %s16_s20 }
  0x10   :  { %s347_s21 = scalar_lea.vmem %s17_s20, 128  ;;  %p352_p6 = scmp.lt.s32.totalorder %s17_s20, %s17_s20 }
  0x11   :  { %p348_p5 = scmp.ne.s32.totalorder %s17_s20, %s347_s21  ;;  %p353_p7 = scmp.lt.s32.totalorder %s347_s21, %s347_s21 }
  0x13   :  { %p354_p8 = por %p353_p7, %p352_p6 }
  0x15   :  { %p355_p9 = pnand %p354_p8, %p348_p5 }
  0x17   :  { %358 = shalt.err (!%p355_p9)
}
  0x18   :  { %s409_s22 = smov 64   ;;  %s410_s23 = smov 4  }
  0x19   :  { %22 = dma.hbm_to_vmem [thread:$0]  %s456_s0, 128, %s17_s20, [#allocation3], %s409_s22, %s409_s22, %s410_s23  }
  0x1a   :  { %s411_s1 = smov [#allocation7]  }
  0x1b   :  { %s40_s26 = sshll.u32 %s411_s1, 4  ;;  %s41_s26 = int_to_ptr.vmem [resolvable:$true] %s40_s26 }
  0x1c   :  { %s367_s27 = scalar_lea.vmem %s41_s26, 1024  ;;  %p372_p11 = scmp.lt.s32.totalorder %s41_s26, %s41_s26 }
  0x1d   :  { %p368_p10 = scmp.ne.s32.totalorder %s41_s26, %s367_s27  ;;  %p373_p12 = scmp.lt.s32.totalorder %s367_s27, %s367_s27 }
  0x1f   :  { %p374_p13 = por %p373_p12, %p372_p11 }
  0x21   :  { %p375_p0 = pnand %p374_p13, %p368_p10 }
  0x23   :  { %378 = shalt.err (!%p375_p0)
}
  0x24   :  { %46 = dma.hbm_to_vmem [thread:$0]  %s458_s2, 1024, %s41_s26, [#allocation6], %s409_s22, %s409_s22, %s410_s23  }
  0x25   :  { %399 = dma.done.wait [#allocation3], 128  }
  0x26   :  { %400 = vsyncadd [#allocation3], 4294967168 }
  0x27   :  { %401 = dma.done.wait [#allocation6], 1280  }
  0x28   :  { %402 = vsyncadd [#allocation6], 4294966016  ;;  %v412_v0 = vmov 0.0   ;;  %v61_v1 = vld [vmem:[#allocation5] sm:$0xff]  ;;  %v62_v2 = vld [vmem:[#allocation5 + $0x8] sm:$0xff]  ;;  %vm413_vm0 = vmmov 0  }
  0x29   :  { %265 = vmatprep.subr.bf16.mxu0 %v412_v0  ;;  %v63_v3 = vadd.f32 1e-10, %v61_v1  ;;  %v64_v4 = vadd.f32 1e-10, %v62_v2  ;;  %v295_v5 = vld [vmem:[#allocation7 + $0x38] sm:$0xff]   ;;  %v296_v6 = vld [vmem:[#allocation7 + $0x30] sm:$0xff]   ;;  %281 = vmatprep.mubr.msk.bf16.mxu0 %vm413_vm0, %v412_v0 }
  0x2a   :  { %266 = vmatpush3.bf16.msra.mxu0 %v295_v5  ;;  %v248_v15 = vld [vmem:[#allocation2] sm:$0xff]   ;;  %v298_v27 = vld [vmem:[#allocation7 + $0x20] sm:$0xff]   ;;  %v299_v28 = vld [vmem:[#allocation7 + $0x18] sm:$0xff]   ;;  %s414_s0 = smov [#allocation8]  }
  0x2b   :  { %303 = vlog2.f32 %v63_v3  ;;  %267 = vmatprep.subr.bf16.mxu0 %v412_v0  ;;  %v249_v18 = vunpack.c.l.bf16 %v248_v15  ;;  %v250_v22 = vunpack.c.h.bf16 %v248_v15  ;;  %v297_v26 = vld [vmem:[#allocation7 + $0x28] sm:$0xff]   ;;  %v300_v29 = vld [vmem:[#allocation7 + $0x10] sm:$0xff]   ;;  %v302_v31 = vld [vmem:[#allocation7] sm:$0xff]   ;;  %s222_s2 = sshll.u32 %s414_s0, 4  ;;  %s223_s2 = int_to_ptr.vmem [resolvable:$true] %s222_s2 }
  0x2c   :  { %305 = vlog2.f32 %v64_v4  ;;  %v301_v30 = vld [vmem:[#allocation7 + $0x8] sm:$0xff]   ;;  %s379_s30 = scalar_lea.vmem %s223_s2, 128  ;;  %p384_p2 = scmp.lt.s32.totalorder %s223_s2, %s223_s2 }
  0x2d   :  { %p380_p1 = scmp.ne.s32.totalorder %s223_s2, %s379_s30  ;;  %p385_p3 = scmp.lt.s32.totalorder %s379_s30, %s379_s30 }
  0x2e   :  { %268 = vmatpush3.bf16.msra.mxu0 %v296_v6 }
  0x2f   :  { %269 = vmatprep.subr.bf16.mxu0 %v412_v0  ;;  %p386_p4 = por %p385_p3, %p384_p2 }
  0x31   :  { %p387_p5 = pnand %p386_p4, %p380_p1 }
  0x32   :  { %270 = vmatpush3.bf16.msra.mxu0 %v297_v26 }
  0x33   :  { %271 = vmatprep.subr.bf16.mxu0 %v412_v0 }
  0x36   :  { %272 = vmatpush3.bf16.msra.mxu0 %v298_v27 }
  0x37   :  { %273 = vmatprep.subr.bf16.mxu0 %v412_v0 }
  0x38   :  { %v304_v7 = vpop.eup %303 }
  0x39   :  { %v306_v8 = vpop.eup %305  ;;  %v66_v9 = vmul.f32 0.6931472, %v304_v7 }
  0x3a   :  { %v68_v10 = vmul.f32 0.6931472, %v306_v8  ;;  %274 = vmatpush3.bf16.msra.mxu0 %v299_v28 }
  0x3b   :  { %v69_v11 = vsub.f32 0.0, %v66_v9  ;;  %275 = vmatprep.subr.bf16.mxu0 %v412_v0 }
  0x3c   :  { %v70_v12 = vsub.f32 0.0, %v68_v10 }
  0x3d   :  { %v71_v13 = vadd.f32 1e-10, %v69_v11 }
  0x3e   :  { %v72_v14 = vadd.f32 1e-10, %v70_v12  ;;  %276 = vmatpush3.bf16.msra.mxu0 %v300_v29 }
  0x3f   :  { %307 = vlog2.f32 %v71_v13  ;;  %277 = vmatprep.subr.bf16.mxu0 %v412_v0 }
  0x40   :  { %309 = vlog2.f32 %v72_v14 }
  0x42   :  { %278 = vmatpush3.bf16.msra.mxu0 %v301_v30 }
  0x43   :  { %279 = vmatprep.subr.bf16.mxu0 %v412_v0 }
  0x46   :  { %280 = vmatpush3.bf16.msra.mxu0 %v302_v31 }
  0x4c   :  { %v308_v16 = vpop.eup %307 }
  0x4d   :  { %v310_v17 = vpop.eup %309  ;;  %v74_v19 = vmul.f32 0.6931472, %v308_v16 }
  0x4e   :  { %v76_v20 = vmul.f32 0.6931472, %v310_v17 }
  0x4f   :  { %v77_v21 = vsub.f32 0.0, %v74_v19 }
  0x50   :  { %v78_v23 = vsub.f32 0.0, %v76_v20 }
  0x51   :  { %v79_v24 = vadd.f32 %v249_v18, %v77_v21 }
  0x52   :  { %v80_v25 = vadd.f32 %v250_v22, %v78_v23 }
  0x53   :  { %81 = vmax.xlane.f32.xlu0 %v79_v24 }
  0x57   :  { %83 = vmax.xlane.f32.xlu0 %v80_v25 }
  0xdc   :  { %v82_v32 = vpop.xlane.xlu0 %81 }
  0xdd   :  { %v85_v33 = vsub.f32 %v79_v24, %v82_v32 }
  0xdf   :  { %v87_v34 = vmul.f32 1.442695, %v85_v33 }
  0xe0   :  { %v84_v35 = vpop.xlane.xlu0 %83 }
  0xe1   :  { %311 = vpow2.f32 %v87_v34  ;;  %v86_v36 = vsub.f32 %v80_v25, %v84_v35 }
  0xe3   :  { %v89_v37 = vmul.f32 1.442695, %v86_v36 }
  0xe5   :  { %313 = vpow2.f32 %v89_v37 }
  0xee   :  { %v312_v38 = vpop.eup %311 }
  0xef   :  { %91 = vadd.xlane.f32.xlu1 %v312_v38 }
  0xf2   :  { %v314_v39 = vpop.eup %313 }
  0xf3   :  { %93 = vadd.xlane.f32.xlu1 %v314_v39  ;;  %v95_v40 = vpack.c.bf16 %v314_v39, %v312_v38 }
  0xf5   :  { %282 = vmatmul.mubr.bf16.vlgmr.msra.gmra.mxu0 %v95_v40 }
 0x178   :  { %v92_v41 = vpop.xlane.xlu1 %91 }
 0x179   :  { %315 = vrcp.f32 %v92_v41 }
 0x17c   :  { %v94_v42 = vpop.xlane.xlu1 %93 }
 0x17d   :  { %317 = vrcp.f32 %v94_v42 }
 0x186   :  { %v316_v45 = vpop.eup %315 }
 0x18a   :  { %v318_v46 = vpop.eup %317 }
 0x1b5   :  { %v194_v43 = vpop.f32.mrf.mxu0 }
 0x1b6   :  { %v205_v48 = vmul.f32 %v316_v45, %v194_v43 }
 0x1b7   :  { %v283_v44 = vpop.f32.mrf.mxu0 }
 0x1b9   :  { %v197_v47 = vpop.f32.mrf.mxu0 }
 0x1ba   :  { %v206_v49 = vmul.f32 %v318_v46, %v197_v47 }
 0x1bb   :  { %v284_v50 = vpop.f32.mrf.mxu0 }
 0x1bc   :  { %v254_v51 = vpack.c.bf16 %v206_v49, %v205_v48 }
 0x1be   :  { %255 = vst [vmem:[#allocation8] sm:$0xff] %v254_v51  }
 0x1bf   :  { %390 = shalt.err (!%p387_p5)
}
 0x1c0   :  { %228 = dma.vmem_to_hbm [thread:$0]  %s223_s2, 128, %s459_s3, [#allocation4], %s409_s22, %s409_s22, %s410_s23  }
 0x1c1   :  { %403 = dma.done.wait [#allocation4], 128  }
 0x1c2   :  { %404 = vsyncadd [#allocation4], 4294967168 }
 0x1c3   :  { %232 = vsyncpa [#allocation3], 1 }
 0x1c4   :  { %233 = vsyncpa [#allocation6], 1 }
 0x1c5   :  { %234 = vsyncpa [#allocation4], 1 }

</bundles_post_ra>
